<compile_context>
chip_gen: v7x
topology: tpu7x:2x2x1
jax: 0.10.0
libtpu: 0.0.40
codegen_flags: <defaults>
</compile_context>

<pallas_src>
import functools

import jax
import jax.numpy as jnp
from jax.experimental import pallas as pl
from jax.experimental.pallas import tpu as pltpu


# ----------------------------- schedule (glue) ------------------------------
def linear_schedule_beta_t(num_timesteps):
    beta_start = 0.0001
    beta_end = 0.02
    return jnp.linspace(beta_start, beta_end, num_timesteps, dtype=jnp.float32)


def _round_up(x, m):
    return ((x + m - 1) // m) * m


def _vmem_capacity_bytes():
    """Physical VMEM of the local TPU generation (fallback: v7x's 64 MiB)."""
    try:
        info = pltpu.get_tpu_info()
        cap = int(getattr(info, "vmem_capacity_bytes", 0))
        if cap > 0:
            return cap
    except Exception:
        pass
    return 64 << 20


def _per_row_vmem_bytes(chw, hw):
    # double-buffered bf16 x+noise blocks (8*chw) + f32 x_t chunks live across
    # the output-channel loop (4*chw) + f32 per-chunk transients (~6 of (1,hw))
    # + lane-padded scale/bias row.
    return 8 * chw + 4 * chw + 24 * hw + 1024


def _pick_block_batch(batch, chw, hw, budget_bytes):
    nb = budget_bytes // _per_row_vmem_bytes(chw, hw)
    nb = max(16, (nb // 16) * 16)          # multiple of 16: dense bf16 sublanes
    nb = min(nb, 4096)
    nb = min(nb, _round_up(batch, 16))
    if batch >= 32:
        # keep >= 2 grid blocks so the 'parallel' split can use both
        # TensorCores on v7x (harmless on single-TC v5e/v6e).
        nb = min(nb, _round_up((batch + 1) // 2, 16))
    return nb


def _vmem_estimate(nb, chw, hw):
    return (2 * 2 * nb * chw * 2      # double-buffered bf16 x + noise blocks
            + 2 * nb * 128 * 4        # scale/bias rows (lane-padded), 2 bufs
            + nb * chw * 4            # f32 x_t chunks live across the o-loop
            + 6 * nb * hw * 4         # f32 per-chunk transients
            + 2 * 8 * hw * 4)         # resident output accumulator


# ------------------------------ Pallas kernel -------------------------------
def ddpm_loss_kernel(w_ref,    # scalar prefetch (SMEM): (C, C) f32 1x1-conv weight
                     x_ref,    # (NB, C*HW) bf16 raw image rows
                     nz_ref,   # (NB, C*HW) bf16 gaussian noise rows
                     s_ref,    # (NB, 2+C) f32: [2*sqrt(ab), sqrt(1-ab), cb2_0..cb2_{C-1}]
                     out_ref,  # (8, HW) f32 resident partial-sum accumulator
                     *, C, HW):
    j = pl.program_id(1)
    nb = x_ref.shape[0]

    @pl.when(j == 0)
    def _():
        out_ref[...] = jnp.zeros_like(out_ref)

    a2 = s_ref[:, 0:1]            # (NB, 1)  2*sqrt(alpha_bar)
    sb = s_ref[:, 1:2]            # (NB, 1)  sqrt(1 - alpha_bar)

    # Stage 1: x_t' = 2*sqrt(ab)*img + sqrt(1-ab)*noise, per channel chunk
    # (the "-sqrt(ab)" constant of img*2-1 is folded into cb2 in the wrapper).
    xt = []
    for c in range(C):
        xc = x_ref[:, c * HW:(c + 1) * HW].astype(jnp.float32)
        nc = nz_ref[:, c * HW:(c + 1) * HW].astype(jnp.float32)
        xt.append(a2 * xc + sb * nc)

    # Stage 2+3: 1x1 conv as C*C broadcast FMAs, add combined bias, squared
    # error vs. the noise target, summed over output channels (all VPU-dense).
    sqsum = None
    for o in range(C):
        acc = w_ref[o, 0] * xt[0]
        for c in range(1, C):
            acc = acc + w_ref[o, c] * xt[c]
        nz_o = nz_ref[:, o * HW:(o + 1) * HW].astype(jnp.float32)
        d = acc + s_ref[:, 2 + o:3 + o] - nz_o
        sq = d * d
        sqsum = sq if sqsum is None else sqsum + sq

    # Fold NB sublanes down to 8 rows and accumulate into the resident output.
    fold = sqsum[0:8, :]
    for k in range(1, nb // 8):
        fold = fold + sqsum[k * 8:(k + 1) * 8, :]
    out_ref[...] += fold


# ------------------------------- wrapper (DDPM) ------------------------------
class DDPMPallas:
    def __init__(self, channels, image_size, timesteps, num_classes=10, emb_key=None):
        self.channels = channels
        self.image_size = image_size
        self.num_timesteps = timesteps
        self.num_classes = num_classes

        self.beta_t = linear_schedule_beta_t(timesteps)
        self.alpha_t = 1.0 - self.beta_t
        self.alphas_t_bar = jnp.cumprod(self.alpha_t, axis=0)
        self.alphas_t_minus_1_bar = jnp.concatenate(
            [jnp.zeros((1,), jnp.float32), self.alphas_t_bar[:-1]])

        # deterministic synthetic conditional-model parameters
        if emb_key is None:
            emb_key = jax.random.PRNGKey(42)
        kw, kb, kt, kc = jax.random.split(emb_key, 4)
        C = channels
        self.w = jax.random.normal(kw, (C, C), jnp.float32) * 0.1
        self.bias = jax.random.normal(kb, (C, 1), jnp.float32) * 0.01
        self.time_emb_table = jax.random.normal(kt, (timesteps, C), jnp.float32) * 0.01
        self.class_emb_table = jax.random.normal(kc, (num_classes, C), jnp.float32) * 0.01

    def forward(self, img, classes, rng):
        # img: (B, C, H, W) float32 (NCHW, PyTorch convention)
        B, C, H, W = img.shape
        HW = H * W
        CHW = C * HW
        # TODO(synk): pad + mask the spatial dim (and exclude padded lanes from
        # the partial sums) when H*W is not a multiple of 128.
        assert HW % 128 == 0, "spatial size must flatten to a multiple of 128 lanes"

        rng_t, rng_n = jax.random.split(rng)
        time = jax.random.randint(rng_t, (B,), 0, self.num_timesteps, dtype=jnp.int32)
        noise = jax.random.normal(rng_n, (B, C, H, W), jnp.float32)

        # per-batch schedule scalars
        ab = self.alphas_t_bar[time].astype(jnp.float32)               # (B,)
        sqrt_ab = jnp.sqrt(ab)                                         # (B,)
        sqrt_1mab = jnp.sqrt(1.0 - ab)                                 # (B,)

        # conv bias + time embedding + class embedding, per (batch, channel)
        cb = (self.bias.reshape(1, C)
              + self.time_emb_table[time]
              + self.class_emb_table[classes]).astype(jnp.float32)     # (B, C)
        # fold the "-sqrt(ab)" constant of (img*2 - 1) through the linear conv:
        #   W @ (x_t' - sqrt(ab)) + cb == W @ x_t' + (cb - sqrt(ab)*rowsum(W))
        cb2 = cb - sqrt_ab[:, None] * jnp.sum(self.w, axis=1)[None, :]  # (B, C)

        # one small per-row array: [2*sqrt(ab), sqrt(1-ab), cb2_0..cb2_{C-1}]
        scal = jnp.concatenate(
            [(2.0 * sqrt_ab)[:, None], sqrt_1mab[:, None], cb2], axis=1)  # (B, 2+C)

        # dense 2-D activations as bf16 (halves HBM traffic, no sublane padding)
        x_bf16 = img.reshape(B, CHW).astype(jnp.bfloat16)
        n_bf16 = noise.reshape(B, CHW).astype(jnp.bfloat16)

        # --- block sizing from this generation's VMEM capacity ---
        cap = _vmem_capacity_bytes()                  # 128 MiB v5e/v6e, 64 MiB v7x
        budget = int(min(cap, 128 << 20) * 0.45)
        NB = _pick_block_batch(B, CHW, HW, budget)

        Bp = _round_up(B, NB)
        num_blocks = Bp // NB
        if num_blocks > 1 and num_blocks % 2 == 1:
            num_blocks += 1
            Bp = num_blocks * NB
        NS = 2 if num_blocks >= 2 else 1              # 2-way split for v7x megacore
        SPB = num_blocks // NS

        pad = Bp - B
        if pad:
            # zero rows contribute exactly 0 to the squared-error sum
            x_bf16 = jnp.pad(x_bf16, ((0, pad), (0, 0)))
            n_bf16 = jnp.pad(n_bf16, ((0, pad), (0, 0)))
            scal = jnp.pad(scal, ((0, pad), (0, 0)))

        vmem_est = _vmem_estimate(NB, CHW, HW)
        vmem_limit = int(max(16 << 20,
                             min(int(vmem_est * 1.4) + (2 << 20), int(cap * 0.85))))

        kernel = functools.partial(ddpm_loss_kernel, C=C, HW=HW)

        grid_spec = pltpu.PrefetchScalarGridSpec(
            num_scalar_prefetch=1,
            grid=(NS, SPB),
            in_specs=[
                pl.BlockSpec((NB, CHW), lambda i, j, w: (i * SPB + j, 0)),   # x (bf16)
                pl.BlockSpec((NB, CHW), lambda i, j, w: (i * SPB + j, 0)),   # noise (bf16)
                pl.BlockSpec((NB, 2 + C), lambda i, j, w: (i * SPB + j, 0)), # scales/bias
            ],
            out_specs=pl.BlockSpec((None, 8, HW), lambda i, j, w: (i, 0, 0)),
        )

        partials = pl.pallas_call(
            kernel,
            out_shape=jax.ShapeDtypeStruct((NS, 8, HW), jnp.float32),
            grid_spec=grid_spec,
            compiler_params=pltpu.CompilerParams(
                dimension_semantics=("parallel", "arbitrary"),
                vmem_limit_bytes=vmem_limit),
        )(self.w, x_bf16, n_bf16, scal)

        # F.mse_loss default reduction: mean (over the real, un-padded elements)
        loss = jnp.sum(partials) / (B * C * H * W)

        aux = dict(time=time, noise=noise, sqrt_ab=sqrt_ab, sqrt_1mab=sqrt_1mab,
                   cb=cb, x_bf16=x_bf16[:B], noise_bf16=n_bf16[:B])
        return loss, aux


# ------------------------------ pure-JAX reference ---------------------------
def reference_loss(x_bf16, noise_bf16, sqrt_ab, sqrt_1mab, w, cb, C, HW):
    B = x_bf16.shape[0]
    x = x_bf16.astype(jnp.float32).reshape(B, C, HW)
    nz = noise_bf16.astype(jnp.float32).reshape(B, C, HW)
    sa = sqrt_ab.reshape(B, 1, 1)
    sb = sqrt_1mab.reshape(B, 1, 1)
    x_t = sa * (x * 2.0 - 1.0) + sb * nz
    pred = jnp.einsum('oc,bcs->bos', w, x_t) + cb[:, :, None]
    diff = pred - nz
    return jnp.mean(diff * diff)


if __name__ == "__main__":
    B, C, H, W = 2, 4, 16, 16
    T = 100
    NUM_CLASSES = 10

    key = jax.random.PRNGKey(0)
    k_img, k_cls, k_fwd = jax.random.split(key, 3)

    img = jax.random.uniform(k_img, (B, C, H, W), jnp.float32)       # NCHW
    classes = jax.random.randint(k_cls, (B,), 0, NUM_CLASSES, dtype=jnp.int32)

    ddpm = DDPMPallas(channels=C, image_size=H, timesteps=T, num_classes=NUM_CLASSES)

    loss, aux = ddpm.forward(img, classes, k_fwd)
    loss = jax.block_until_ready(loss)

    ref = reference_loss(aux["x_bf16"], aux["noise_bf16"], aux["sqrt_ab"],
                         aux["sqrt_1mab"], ddpm.w, aux["cb"], C, H * W)
    ref = jax.block_until_ready(ref)

    assert jnp.allclose(loss, ref, rtol=1e-4, atol=1e-5), (loss, ref)
    print("KERNEL_OK")
</pallas_src>

<mosaic_0001>
module attributes {stable_mosaic.version = 11 : i64} {
  func.func @ddpm_loss_kernel(%arg0: i32, %arg1: i32, %arg2: memref<4x4xf32, #tpu.memory_space<smem>>, %arg3: memref<16x1024xbf16, #tpu.memory_space<vmem>>, %arg4: memref<16x1024xbf16, #tpu.memory_space<vmem>>, %arg5: memref<16x6xf32, #tpu.memory_space<vmem>>, %arg6: memref<1x8x256xf32, #tpu.memory_space<vmem>>) attributes {dimension_semantics = [#tpu.dimension_semantics<parallel>, #tpu.dimension_semantics<arbitrary>], iteration_bounds = array<i64: 1, 1>, scalar_prefetch = 1 : i64, scratch_operands = 0 : i64, tpu.core_type = #tpu.core_type<tc>, window_params = [{transform_indices = @transform_0, window_bounds = array<i64: 16, 1024>}, {transform_indices = @transform_1, window_bounds = array<i64: 16, 1024>}, {transform_indices = @transform_2, window_bounds = array<i64: 16, 6>}, {transform_indices = @transform_3, window_bounds = array<i64: 1, 8, 256>}]} {
    %c0_i32 = arith.constant 0 : i32
    %0 = arith.cmpi eq, %arg1, %c0_i32 : i32
    %1 = arith.extui %0 : i1 to i32
    %c0_i32_0 = arith.constant 0 : i32
    %2 = arith.cmpi ne, %1, %c0_i32_0 : i32
    scf.if %2 {
      %cst = arith.constant 0.000000e+00 : f32
      %141 = vector.broadcast %cst : f32 to vector<8x256xf32>
      %c0_66 = arith.constant 0 : index
      %c0_67 = arith.constant 0 : index
      %c0_68 = arith.constant 0 : index
      %142 = vector.load %arg6[%c0_66, %c0_67, %c0_68] : memref<1x8x256xf32, #tpu.memory_space<vmem>>, vector<1x8x256xf32>
      %143 = vector.shape_cast %142 : vector<1x8x256xf32> to vector<8x256xf32>
      %144 = vector.shape_cast %141 : vector<8x256xf32> to vector<1x8x256xf32>
      tpu.vector_store %arg6[%c0_66, %c0_67, %c0_68], %144 {strides = array<i32>} : memref<1x8x256xf32, #tpu.memory_space<vmem>>, vector<1x8x256xf32>,
    } else {
    }
    %c0 = arith.constant 0 : index
    %c0_1 = arith.constant 0 : index
    %3 = vector.load %arg5[%c0, %c0_1] : memref<16x6xf32, #tpu.memory_space<vmem>>, vector<16x1xf32>
    %c0_2 = arith.constant 0 : index
    %c1 = arith.constant 1 : index
    %4 = vector.load %arg5[%c0_2, %c1] : memref<16x6xf32, #tpu.memory_space<vmem>>, vector<16x1xf32>
    %c0_3 = arith.constant 0 : index
    %c0_4 = arith.constant 0 : index
    %5 = vector.load %arg3[%c0_3, %c0_4] : memref<16x1024xbf16, #tpu.memory_space<vmem>>, vector<16x256xbf16>
    %6 = arith.extf %5 : vector<16x256xbf16> to vector<16x256xf32>
    %c0_5 = arith.constant 0 : index
    %c0_6 = arith.constant 0 : index
    %7 = vector.load %arg4[%c0_5, %c0_6] : memref<16x1024xbf16, #tpu.memory_space<vmem>>, vector<16x256xbf16>
    %8 = arith.extf %7 : vector<16x256xbf16> to vector<16x256xf32>
    %9 = vector.broadcast %3 : vector<16x1xf32> to vector<16x256xf32>
    %10 = arith.mulf %9, %6 : vector<16x256xf32>
    %11 = vector.broadcast %4 : vector<16x1xf32> to vector<16x256xf32>
    %12 = arith.mulf %11, %8 : vector<16x256xf32>
    %13 = arith.addf %10, %12 : vector<16x256xf32>
    %c0_7 = arith.constant 0 : index
    %c256 = arith.constant 256 : index
    %14 = vector.load %arg3[%c0_7, %c256] : memref<16x1024xbf16, #tpu.memory_space<vmem>>, vector<16x256xbf16>
    %15 = arith.extf %14 : vector<16x256xbf16> to vector<16x256xf32>
    %c0_8 = arith.constant 0 : index
    %c256_9 = arith.constant 256 : index
    %16 = vector.load %arg4[%c0_8, %c256_9] : memref<16x1024xbf16, #tpu.memory_space<vmem>>, vector<16x256xbf16>
    %17 = arith.extf %16 : vector<16x256xbf16> to vector<16x256xf32>
    %18 = vector.broadcast %3 : vector<16x1xf32> to vector<16x256xf32>
    %19 = arith.mulf %18, %15 : vector<16x256xf32>
    %20 = vector.broadcast %4 : vector<16x1xf32> to vector<16x256xf32>
    %21 = arith.mulf %20, %17 : vector<16x256xf32>
    %22 = arith.addf %19, %21 : vector<16x256xf32>
    %c0_10 = arith.constant 0 : index
    %c512 = arith.constant 512 : index
    %23 = vector.load %arg3[%c0_10, %c512] : memref<16x1024xbf16, #tpu.memory_space<vmem>>, vector<16x256xbf16>
    %24 = arith.extf %23 : vector<16x256xbf16> to vector<16x256xf32>
    %c0_11 = arith.constant 0 : index
    %c512_12 = arith.constant 512 : index
    %25 = vector.load %arg4[%c0_11, %c512_12] : memref<16x1024xbf16, #tpu.memory_space<vmem>>, vector<16x256xbf16>
    %26 = arith.extf %25 : vector<16x256xbf16> to vector<16x256xf32>
    %27 = vector.broadcast %3 : vector<16x1xf32> to vector<16x256xf32>
    %28 = arith.mulf %27, %24 : vector<16x256xf32>
    %29 = vector.broadcast %4 : vector<16x1xf32> to vector<16x256xf32>
    %30 = arith.mulf %29, %26 : vector<16x256xf32>
    %31 = arith.addf %28, %30 : vector<16x256xf32>
    %c0_13 = arith.constant 0 : index
    %c768 = arith.constant 768 : index
    %32 = vector.load %arg3[%c0_13, %c768] : memref<16x1024xbf16, #tpu.memory_space<vmem>>, vector<16x256xbf16>
    %33 = arith.extf %32 : vector<16x256xbf16> to vector<16x256xf32>
    %c0_14 = arith.constant 0 : index
    %c768_15 = arith.constant 768 : index
    %34 = vector.load %arg4[%c0_14, %c768_15] : memref<16x1024xbf16, #tpu.memory_space<vmem>>, vector<16x256xbf16>
    %35 = arith.extf %34 : vector<16x256xbf16> to vector<16x256xf32>
    %36 = vector.broadcast %3 : vector<16x1xf32> to vector<16x256xf32>
    %37 = arith.mulf %36, %33 : vector<16x256xf32>
    %38 = vector.broadcast %4 : vector<16x1xf32> to vector<16x256xf32>
    %39 = arith.mulf %38, %35 : vector<16x256xf32>
    %40 = arith.addf %37, %39 : vector<16x256xf32>
    %c0_16 = arith.constant 0 : index
    %c0_17 = arith.constant 0 : index
    %41 = memref.load %arg2[%c0_16, %c0_17] : memref<4x4xf32, #tpu.memory_space<smem>>
    %42 = vector.broadcast %41 : f32 to vector<16x256xf32>
    %43 = arith.mulf %42, %13 : vector<16x256xf32>
    %c0_18 = arith.constant 0 : index
    %c1_19 = arith.constant 1 : index
    %44 = memref.load %arg2[%c0_18, %c1_19] : memref<4x4xf32, #tpu.memory_space<smem>>
    %45 = vector.broadcast %44 : f32 to vector<16x256xf32>
    %46 = arith.mulf %45, %22 : vector<16x256xf32>
    %47 = arith.addf %43, %46 : vector<16x256xf32>
    %c0_20 = arith.constant 0 : index
    %c2 = arith.constant 2 : index
    %48 = memref.load %arg2[%c0_20, %c2] : memref<4x4xf32, #tpu.memory_space<smem>>
    %49 = vector.broadcast %48 : f32 to vector<16x256xf32>
    %50 = arith.mulf %49, %31 : vector<16x256xf32>
    %51 = arith.addf %47, %50 : vector<16x256xf32>
    %c0_21 = arith.constant 0 : index
    %c3 = arith.constant 3 : index
    %52 = memref.load %arg2[%c0_21, %c3] : memref<4x4xf32, #tpu.memory_space<smem>>
    %53 = vector.broadcast %52 : f32 to vector<16x256xf32>
    %54 = arith.mulf %53, %40 : vector<16x256xf32>
    %55 = arith.addf %51, %54 : vector<16x256xf32>
    %c0_22 = arith.constant 0 : index
    %c0_23 = arith.constant 0 : index
    %56 = vector.load %arg4[%c0_22, %c0_23] : memref<16x1024xbf16, #tpu.memory_space<vmem>>, vector<16x256xbf16>
    %57 = arith.extf %56 : vector<16x256xbf16> to vector<16x256xf32>
    %c0_24 = arith.constant 0 : index
    %c2_25 = arith.constant 2 : index
    %58 = vector.load %arg5[%c0_24, %c2_25] : memref<16x6xf32, #tpu.memory_space<vmem>>, vector<16x1xf32>
    %59 = vector.broadcast %58 : vector<16x1xf32> to vector<16x256xf32>
    %60 = arith.addf %55, %59 : vector<16x256xf32>
    %61 = arith.subf %60, %57 : vector<16x256xf32>
    %62 = arith.mulf %61, %61 : vector<16x256xf32>
    %c1_26 = arith.constant 1 : index
    %c0_27 = arith.constant 0 : index
    %63 = memref.load %arg2[%c1_26, %c0_27] : memref<4x4xf32, #tpu.memory_space<smem>>
    %64 = vector.broadcast %63 : f32 to vector<16x256xf32>
    %65 = arith.mulf %64, %13 : vector<16x256xf32>
    %c1_28 = arith.constant 1 : index
    %c1_29 = arith.constant 1 : index
    %66 = memref.load %arg2[%c1_28, %c1_29] : memref<4x4xf32, #tpu.memory_space<smem>>
    %67 = vector.broadcast %66 : f32 to vector<16x256xf32>
    %68 = arith.mulf %67, %22 : vector<16x256xf32>
    %69 = arith.addf %65, %68 : vector<16x256xf32>
    %c1_30 = arith.constant 1 : index
    %c2_31 = arith.constant 2 : index
    %70 = memref.load %arg2[%c1_30, %c2_31] : memref<4x4xf32, #tpu.memory_space<smem>>
    %71 = vector.broadcast %70 : f32 to vector<16x256xf32>
    %72 = arith.mulf %71, %31 : vector<16x256xf32>
    %73 = arith.addf %69, %72 : vector<16x256xf32>
    %c1_32 = arith.constant 1 : index
    %c3_33 = arith.constant 3 : index
    %74 = memref.load %arg2[%c1_32, %c3_33] : memref<4x4xf32, #tpu.memory_space<smem>>
    %75 = vector.broadcast %74 : f32 to vector<16x256xf32>
    %76 = arith.mulf %75, %40 : vector<16x256xf32>
    %77 = arith.addf %73, %76 : vector<16x256xf32>
    %c0_34 = arith.constant 0 : index
    %c256_35 = arith.constant 256 : index
    %78 = vector.load %arg4[%c0_34, %c256_35] : memref<16x1024xbf16, #tpu.memory_space<vmem>>, vector<16x256xbf16>
    %79 = arith.extf %78 : vector<16x256xbf16> to vector<16x256xf32>
    %c0_36 = arith.constant 0 : index
    %c3_37 = arith.constant 3 : index
    %80 = vector.load %arg5[%c0_36, %c3_37] : memref<16x6xf32, #tpu.memory_space<vmem>>, vector<16x1xf32>
    %81 = vector.broadcast %80 : vector<16x1xf32> to vector<16x256xf32>
    %82 = arith.addf %77, %81 : vector<16x256xf32>
    %83 = arith.subf %82, %79 : vector<16x256xf32>
    %84 = arith.mulf %83, %83 : vector<16x256xf32>
    %85 = arith.addf %62, %84 : vector<16x256xf32>
    %c2_38 = arith.constant 2 : index
    %c0_39 = arith.constant 0 : index
    %86 = memref.load %arg2[%c2_38, %c0_39] : memref<4x4xf32, #tpu.memory_space<smem>>
    %87 = vector.broadcast %86 : f32 to vector<16x256xf32>
    %88 = arith.mulf %87, %13 : vector<16x256xf32>
    %c2_40 = arith.constant 2 : index
    %c1_41 = arith.constant 1 : index
    %89 = memref.load %arg2[%c2_40, %c1_41] : memref<4x4xf32, #tpu.memory_space<smem>>
    %90 = vector.broadcast %89 : f32 to vector<16x256xf32>
    %91 = arith.mulf %90, %22 : vector<16x256xf32>
    %92 = arith.addf %88, %91 : vector<16x256xf32>
    %c2_42 = arith.constant 2 : index
    %c2_43 = arith.constant 2 : index
    %93 = memref.load %arg2[%c2_42, %c2_43] : memref<4x4xf32, #tpu.memory_space<smem>>
    %94 = vector.broadcast %93 : f32 to vector<16x256xf32>
    %95 = arith.mulf %94, %31 : vector<16x256xf32>
    %96 = arith.addf %92, %95 : vector<16x256xf32>
    %c2_44 = arith.constant 2 : index
    %c3_45 = arith.constant 3 : index
    %97 = memref.load %arg2[%c2_44, %c3_45] : memref<4x4xf32, #tpu.memory_space<smem>>
    %98 = vector.broadcast %97 : f32 to vector<16x256xf32>
    %99 = arith.mulf %98, %40 : vector<16x256xf32>
    %100 = arith.addf %96, %99 : vector<16x256xf32>
    %c0_46 = arith.constant 0 : index
    %c512_47 = arith.constant 512 : index
    %101 = vector.load %arg4[%c0_46, %c512_47] : memref<16x1024xbf16, #tpu.memory_space<vmem>>, vector<16x256xbf16>
    %102 = arith.extf %101 : vector<16x256xbf16> to vector<16x256xf32>
    %c0_48 = arith.constant 0 : index
    %c4 = arith.constant 4 : index
    %103 = vector.load %arg5[%c0_48, %c4] : memref<16x6xf32, #tpu.memory_space<vmem>>, vector<16x1xf32>
    %104 = vector.broadcast %103 : vector<16x1xf32> to vector<16x256xf32>
    %105 = arith.addf %100, %104 : vector<16x256xf32>
    %106 = arith.subf %105, %102 : vector<16x256xf32>
    %107 = arith.mulf %106, %106 : vector<16x256xf32>
    %108 = arith.addf %85, %107 : vector<16x256xf32>
    %c3_49 = arith.constant 3 : index
    %c0_50 = arith.constant 0 : index
    %109 = memref.load %arg2[%c3_49, %c0_50] : memref<4x4xf32, #tpu.memory_space<smem>>
    %110 = vector.broadcast %109 : f32 to vector<16x256xf32>
    %111 = arith.mulf %110, %13 : vector<16x256xf32>
    %c3_51 = arith.constant 3 : index
    %c1_52 = arith.constant 1 : index
    %112 = memref.load %arg2[%c3_51, %c1_52] : memref<4x4xf32, #tpu.memory_space<smem>>
    %113 = vector.broadcast %112 : f32 to vector<16x256xf32>
    %114 = arith.mulf %113, %22 : vector<16x256xf32>
    %115 = arith.addf %111, %114 : vector<16x256xf32>
    %c3_53 = arith.constant 3 : index
    %c2_54 = arith.constant 2 : index
    %116 = memref.load %arg2[%c3_53, %c2_54] : memref<4x4xf32, #tpu.memory_space<smem>>
    %117 = vector.broadcast %116 : f32 to vector<16x256xf32>
    %118 = arith.mulf %117, %31 : vector<16x256xf32>
    %119 = arith.addf %115, %118 : vector<16x256xf32>
    %c3_55 = arith.constant 3 : index
    %c3_56 = arith.constant 3 : index
    %120 = memref.load %arg2[%c3_55, %c3_56] : memref<4x4xf32, #tpu.memory_space<smem>>
    %121 = vector.broadcast %120 : f32 to vector<16x256xf32>
    %122 = arith.mulf %121, %40 : vector<16x256xf32>
    %123 = arith.addf %119, %122 : vector<16x256xf32>
    %c0_57 = arith.constant 0 : index
    %c768_58 = arith.constant 768 : index
    %124 = vector.load %arg4[%c0_57, %c768_58] : memref<16x1024xbf16, #tpu.memory_space<vmem>>, vector<16x256xbf16>
    %125 = arith.extf %124 : vector<16x256xbf16> to vector<16x256xf32>
    %c0_59 = arith.constant 0 : index
    %c5 = arith.constant 5 : index
    %126 = vector.load %arg5[%c0_59, %c5] : memref<16x6xf32, #tpu.memory_space<vmem>>, vector<16x1xf32>
    %127 = vector.broadcast %126 : vector<16x1xf32> to vector<16x256xf32>
    %128 = arith.addf %123, %127 : vector<16x256xf32>
    %129 = arith.subf %128, %125 : vector<16x256xf32>
    %130 = arith.mulf %129, %129 : vector<16x256xf32>
    %131 = arith.addf %108, %130 : vector<16x256xf32>
    %132 = vector.extract_strided_slice %131 {offsets = [0, 0], sizes = [8, 256], strides = [1, 1]} : vector<16x256xf32> to vector<8x256xf32>
    %133 = vector.extract_strided_slice %131 {offsets = [8, 0], sizes = [8, 256], strides = [1, 1]} : vector<16x256xf32> to vector<8x256xf32>
    %134 = arith.addf %132, %133 : vector<8x256xf32>
    %c0_60 = arith.constant 0 : index
    %c0_61 = arith.constant 0 : index
    %c0_62 = arith.constant 0 : index
    %135 = vector.load %arg6[%c0_60, %c0_61, %c0_62] : memref<1x8x256xf32, #tpu.memory_space<vmem>>, vector<1x8x256xf32>
    %136 = vector.shape_cast %135 : vector<1x8x256xf32> to vector<8x256xf32>
    %137 = arith.addf %136, %134 : vector<8x256xf32>
    %c0_63 = arith.constant 0 : index
    %c0_64 = arith.constant 0 : index
    %c0_65 = arith.constant 0 : index
    %138 = vector.load %arg6[%c0_63, %c0_64, %c0_65] : memref<1x8x256xf32, #tpu.memory_space<vmem>>, vector<1x8x256xf32>
    %139 = vector.shape_cast %138 : vector<1x8x256xf32> to vector<8x256xf32>
    %140 = vector.shape_cast %137 : vector<8x256xf32> to vector<1x8x256xf32>
    tpu.vector_store %arg6[%c0_63, %c0_64, %c0_65], %140 {strides = array<i32>} : memref<1x8x256xf32, #tpu.memory_space<vmem>>, vector<1x8x256xf32>,
    return
  }
  func.func @transform_0(%arg0: i32, %arg1: i32, %arg2: memref<4x4xf32, #tpu.memory_space<smem>>) -> (i32, i32) {
    %c1_i32 = arith.constant 1 : i32
    %0 = arith.muli %arg0, %c1_i32 : i32
    %1 = arith.addi %0, %arg1 : i32
    %c0_i32 = arith.constant 0 : i32
    %c0_i32_0 = arith.constant 0 : i32
    return %1, %c0_i32 : i32, i32
  }
  func.func @transform_1(%arg0: i32, %arg1: i32, %arg2: memref<4x4xf32, #tpu.memory_space<smem>>) -> (i32, i32) {
    %c1_i32 = arith.constant 1 : i32
    %0 = arith.muli %arg0, %c1_i32 : i32
    %1 = arith.addi %0, %arg1 : i32
    %c0_i32 = arith.constant 0 : i32
    %c0_i32_0 = arith.constant 0 : i32
    return %1, %c0_i32 : i32, i32
  }
  func.func @transform_2(%arg0: i32, %arg1: i32, %arg2: memref<4x4xf32, #tpu.memory_space<smem>>) -> (i32, i32) {
    %c1_i32 = arith.constant 1 : i32
    %0 = arith.muli %arg0, %c1_i32 : i32
    %1 = arith.addi %0, %arg1 : i32
    %c0_i32 = arith.constant 0 : i32
    %c0_i32_0 = arith.constant 0 : i32
    return %1, %c0_i32 : i32, i32
  }
  func.func @transform_3(%arg0: i32, %arg1: i32, %arg2: memref<4x4xf32, #tpu.memory_space<smem>>) -> (i32, i32, i32) {
    %c0_i32 = arith.constant 0 : i32
    %c0_i32_0 = arith.constant 0 : i32
    %c0_i32_1 = arith.constant 0 : i32
    return %arg0, %c0_i32, %c0_i32_0 : i32, i32, i32
  }
}

</mosaic_0001>

<bundles_post_ra>
// kernel: tpu_custom_call.1
= control target key start
LH: loop header
LB: loop body
LE: loop exit
PB: predicated region body
PF: predicated region fallthrough
CT: control target
= control target key end

     0   :  { %s1041_s0 = inlined_call_operand.vmem [shape: f32[4,4], index: 0, kind: input, shape index: {}]   ;;  %s1042_s1 = inlined_call_operand.hbm [shape: bf16[16,1024], index: 1, kind: input, shape index: {}]   ;;  %s1043_s2 = inlined_call_operand.hbm [shape: bf16[16,1024], index: 2, kind: input, shape index: {}]   ;;  %s1044_s3 = inlined_call_operand.vmem [shape: f32[16,6], index: 3, kind: input, shape index: {}]   ;;  %s1045_s4 = inlined_call_operand.hbm [shape: f32[1,8,256], index: 4, kind: output, shape index: {}]  }
   0x1   :  { %s9_s17 = sshll.u32 %s1041_s0, 4  ;;  %s10_s17 = int_to_ptr.vmem [resolvable:$true] %s9_s17 }
   0x2   :  { %s511_s18 = scalar_lea.vmem %s10_s17, 64  ;;  %p516_p1 = scmp.lt.s32.totalorder %s10_s17, %s10_s17 }
   0x3   :  { %p512_p0 = scmp.ne.s32.totalorder %s10_s17, %s511_s18  ;;  %p517_p2 = scmp.lt.s32.totalorder %s511_s18, %s511_s18 }
   0x5   :  { %p518_p3 = por %p517_p2, %p516_p1 }
   0x7   :  { %p519_p4 = pnand %p518_p3, %p512_p0 }
   0x9   :  { %522 = shalt.err (!%p519_p4)  }
   0xa   :  { %s597_s19 = smov [#allocation3]  }
   0xb   :  { %12 = dma.vmem_to_smem %s10_s17, 64, %s597_s19, [#allocation2] }
   0xc   :  { %589 = dma.done.wait [#allocation2], 64 }
   0xd   :  { %590 = vsyncadd [#allocation2], 4294967232 }
   0xe   :  { %14 = sfence }
   0xf   :  { %15 = vsyncpa [#allocation5], 0 }
  0x10   :  { %16 = vsyncpa [#allocation8], 0 }
  0x11   :  { %17 = vsyncpa [#allocation6], 0  ;;  %s598_s20 = smov [#allocation4]   ;;  %s523_s23 = scalar_lea.hbm %s1042_s1, 1024 }
  0x12   :  { %s28_s21 = sshll.u32 %s598_s20, 4  ;;  %p524_p5 = scmp.ne.s32.totalorder %s1042_s1, %s523_s23  ;;  %s29_s21 = int_to_ptr.vmem [resolvable:$true] %s28_s21 }
  0x13   :  { %p527_p6 = scmp.lt.u32.totalorder %s523_s23, %s1042_s1 }
  0x15   :  { %p529_p7 = pnand %p527_p6, %p524_p5 }
  0x17   :  { %532 = shalt.err (!%p529_p7)
}
  0x18   :  { %s533_s28 = scalar_lea.vmem %s29_s21, 1024  ;;  %p538_p9 = scmp.lt.s32.totalorder %s29_s21, %s29_s21 }
  0x19   :  { %p534_p8 = scmp.ne.s32.totalorder %s29_s21, %s533_s28  ;;  %p539_p10 = scmp.lt.s32.totalorder %s533_s28, %s533_s28 }
  0x1b   :  { %p540_p11 = por %p539_p10, %p538_p9 }
  0x1d   :  { %p541_p12 = pnand %p540_p11, %p534_p8 }
  0x1f   :  { %544 = shalt.err (!%p541_p12)
}
  0x20   :  { %s599_s29 = smov 512   ;;  %s600_s30 = smov 32  }
  0x21   :  { %34 = dma.hbm_to_vmem [thread:$0]  %s1042_s1, 1024, %s29_s21, [#allocation5], %s599_s29, %s599_s29, %s600_s30  }
  0x22   :  { %s601_s7 = smov [#allocation7]   ;;  %s545_s11 = scalar_lea.hbm %s1043_s2, 1024 }
  0x23   :  { %s45_s8 = sshll.u32 %s601_s7, 4  ;;  %p546_p13 = scmp.ne.s32.totalorder %s1043_s2, %s545_s11  ;;  %s46_s8 = int_to_ptr.vmem [resolvable:$true] %s45_s8 }
  0x24   :  { %p549_p0 = scmp.lt.u32.totalorder %s545_s11, %s1043_s2 }
  0x26   :  { %p551_p1 = pnand %p549_p0, %p546_p13 }
  0x28   :  { %554 = shalt.err (!%p551_p1)
}
  0x29   :  { %s555_s16 = scalar_lea.vmem %s46_s8, 1024  ;;  %p560_p3 = scmp.lt.s32.totalorder %s46_s8, %s46_s8 }
  0x2a   :  { %p556_p2 = scmp.ne.s32.totalorder %s46_s8, %s555_s16  ;;  %p561_p4 = scmp.lt.s32.totalorder %s555_s16, %s555_s16 }
  0x2c   :  { %p562_p5 = por %p561_p4, %p560_p3 }
  0x2e   :  { %p563_p6 = pnand %p562_p5, %p556_p2 }
  0x30   :  { %566 = shalt.err (!%p563_p6)
}
  0x31   :  { %51 = dma.hbm_to_vmem [thread:$0]  %s1043_s2, 1024, %s46_s8, [#allocation8], %s599_s29, %s599_s29, %s600_s30  }
  0x32   :  { %591 = dma.done.wait [#allocation5], 1024  }
  0x33   :  { %592 = vsyncadd [#allocation5], 4294966272 }
  0x34   :  { %593 = dma.done.wait [#allocation8], 1024  }
  0x35   :  { %594 = vsyncadd [#allocation8], 4294966272  ;;  %v602_v0 = vmov 1   ;;  %v603_v1 = vmov 0   ;;  %v92_v2 = vld [vmem:[%s1044_s3] sm:$0xff]  ;;  %v93_v3 = vld [vmem:[%s1044_s3 + $0x8] sm:$0xff] }
  0x36   :  { %503 = vset.pattern.permute.xlu1 %v602_v0  ;;  %502 = vset.pattern.permute.xlu0 %v603_v1  ;;  %v604_v4 = vmov 2   ;;  %v605_v5 = vmov 3   ;;  %v606_v6 = vmov 4   ;;  %v607_v7 = vmov 5   ;;  %s667_s2 = sld [smem:[#allocation3]]  ;;  %s669_s3 = sld [smem:[#allocation3 + $0x1]] }
  0x37   :  { %121 = vperm.xlu1 %503, %v92_v2   ;;  %108 = vperm.xlu0 %502, %v92_v2   ;;  %s671_s0 = sld [smem:[#allocation3 + $0x2]]  ;;  %s673_s22 = sld [smem:[#allocation3 + $0x3]]  ;;  %v94_v8 = vld [vmem:[#allocation4] sm:$0xff]  ;;  %v681_v12 = vld [vmem:[#allocation4 + $0x28] sm:$0xff]  ;;  %v685_v14 = vld [vmem:[#allocation4 + $0x30] sm:$0xff] }
  0x38   :  { %v675_v9 = vld [vmem:[#allocation7] sm:$0xff]  ;;  %v683_v13 = vld [vmem:[#allocation7 + $0x28] sm:$0xff]  ;;  %v687_v15 = vld [vmem:[#allocation7 + $0x30] sm:$0xff]  ;;  %v96_v16 = vunpack.c.l.bf16 %v94_v8  ;;  %v97_v17 = vunpack.c.h.bf16 %v94_v8  ;;  %v140_v26 = vunpack.c.l.bf16 %v681_v12  ;;  %v141_v27 = vunpack.c.h.bf16 %v681_v12  ;;  %s785_s23 = sld [smem:[#allocation3 + $0x80]]  ;;  %s787_s24 = sld [smem:[#allocation3 + $0x81]] }
  0x39   :  { %v677_v10 = vld [vmem:[#allocation4 + $0x20] sm:$0xff]  ;;  %v102_v18 = vunpack.c.l.bf16 %v675_v9  ;;  %v103_v19 = vunpack.c.h.bf16 %v675_v9  ;;  %v695_v24 = vld [vmem:[#allocation4 + $0x38] sm:$0xff]  ;;  %v1048_v28 = vunpack.c.l.bf16 %v683_v13  ;;  %v1046_v29 = vunpack.c.h.bf16 %v683_v13  ;;  %v136_v34 = vld [vmem:[#allocation4 + $0x8] sm:$0xff]  ;;  %s805_s25 = sld [smem:[#allocation3 + $0x82]]  ;;  %s807_s26 = sld [smem:[#allocation3 + $0x83]] }
  0x3a   :  { %v679_v11 = vld [vmem:[#allocation7 + $0x20] sm:$0xff]  ;;  %v98_v20 = vunpack.c.l.bf16 %v677_v10  ;;  %v99_v21 = vunpack.c.h.bf16 %v677_v10  ;;  %v697_v25 = vld [vmem:[#allocation7 + $0x38] sm:$0xff]  ;;  %v164_v30 = vunpack.c.l.bf16 %v685_v14  ;;  %v165_v31 = vunpack.c.h.bf16 %v685_v14  ;;  %v707_v35 = vld [vmem:[#allocation7 + $0x8] sm:$0xff]  ;;  %s827_s27 = sld [smem:[#allocation3 + $0x100]]  ;;  %s829_s28 = sld [smem:[#allocation3 + $0x101]] }
  0x3b   :  { %125 = vperm.xlu1 %503, %v93_v3   ;;  %113 = vperm.xlu0 %502, %v93_v3   ;;  %v104_v22 = vunpack.c.l.bf16 %v679_v11  ;;  %v105_v23 = vunpack.c.h.bf16 %v679_v11  ;;  %v1047_v32 = vunpack.c.l.bf16 %v687_v15  ;;  %v1050_v33 = vunpack.c.h.bf16 %v687_v15  ;;  %v160_v40 = vld [vmem:[#allocation4 + $0x10] sm:$0xff]  ;;  %v729_v50 = vld [vmem:[#allocation4 + $0x18] sm:$0xff]  ;;  %s835_s29 = sld [smem:[#allocation3 + $0x102]]  ;;  %s837_s30 = sld [smem:[#allocation3 + $0x103]] }
  0x3c   :  { %v188_v36 = vunpack.c.l.bf16 %v695_v24  ;;  %v189_v37 = vunpack.c.h.bf16 %v695_v24  ;;  %v1049_v38 = vunpack.c.l.bf16 %v697_v25  ;;  %v1051_v39 = vunpack.c.h.bf16 %v697_v25  ;;  %v713_v41 = vld [vmem:[#allocation7 + $0x10] sm:$0xff]  ;;  %v731_v51 = vld [vmem:[#allocation7 + $0x18] sm:$0xff]  ;;  %s847_s5 = sld [smem:[#allocation3 + $0x180]]  ;;  %s849_s6 = sld [smem:[#allocation3 + $0x181]] }
  0x3d   :  { %v716_v42 = vstv %s667_s2  ;;  %v719_v43 = vstv %s669_s3  ;;  %v722_v44 = vstv %s671_s0  ;;  %v725_v45 = vstv %s673_s22  ;;  %s875_s7 = sld [smem:[#allocation3 + $0x182]]  ;;  %s877_s8 = sld [smem:[#allocation3 + $0x183]] }
  0x3e   :  { %v138_v46 = vunpack.c.l.bf16 %v136_v34  ;;  %v139_v47 = vunpack.c.h.bf16 %v136_v34  ;;  %v1057_v48 = vunpack.c.l.bf16 %v707_v35  ;;  %v1056_v49 = vunpack.c.h.bf16 %v707_v35  ;;  %s608_s9 = smov [#allocation9]  }
  0x3f   :  { %505 = vset.pattern.permute.xlu1 %v604_v4  ;;  %504 = vset.pattern.permute.xlu0 %v604_v4  ;;  %v162_v54 = vunpack.c.l.bf16 %v160_v40  ;;  %v163_v55 = vunpack.c.h.bf16 %v160_v40  ;;  %v1055_v56 = vunpack.c.l.bf16 %v713_v41  ;;  %v1054_v57 = vunpack.c.h.bf16 %v713_v41  ;;  %s458_s10 = sshll.u32 %s608_s9, 4  ;;  %s459_s10 = int_to_ptr.vmem [resolvable:$true] %s458_s10 }
  0x40   :  { %249 = vperm.xlu1 %505, %v93_v3   ;;  %245 = vperm.xlu0 %504, %v92_v2   ;;  %v186_v62 = vunpack.c.l.bf16 %v729_v50  ;;  %v187_v63 = vunpack.c.h.bf16 %v729_v50  ;;  %v1053_v0 = vunpack.c.l.bf16 %v731_v51  ;;  %v1052_v1 = vunpack.c.h.bf16 %v731_v51  ;;  %s567_s11 = scalar_lea.vmem %s459_s10, 256  ;;  %p572_p8 = scmp.lt.s32.totalorder %s459_s10, %s459_s10 }
  0x41   :  { %p568_p7 = scmp.ne.s32.totalorder %s459_s10, %s567_s11  ;;  %p573_p9 = scmp.lt.s32.totalorder %s567_s11, %s567_s11 }
  0x43   :  { %p574_p10 = por %p573_p9, %p572_p8 }
  0x44   :  { %506 = vset.pattern.permute.xlu1 %v605_v5  ;;  %507 = vset.pattern.permute.xlu0 %v605_v5 }
  0x45   :  { %301 = vperm.xlu1 %506, %v92_v2   ;;  %305 = vperm.xlu0 %507, %v93_v3   ;;  %p575_p11 = pnand %p574_p10, %p568_p7 }
  0x49   :  { %508 = vset.pattern.permute.xlu1 %v606_v6  ;;  %509 = vset.pattern.permute.xlu0 %v607_v7 }
  0x4a   :  { %361 = vperm.xlu1 %508, %v92_v2   ;;  %421 = vperm.xlu0 %509, %v92_v2  }
  0x4e   :  { %365 = vperm.xlu1 %508, %v93_v3  }
  0x52   :  { %510 = vset.pattern.permute.xlu1 %v607_v7 }
  0x53   :  { %425 = vperm.xlu1 %510, %v93_v3  }
  0xb6   :  { %v733_v52 = vpop.permute.xlu1 %121  ;;  %v735_v53 = vpop.permute.xlu0 %108 }
  0xb7   :  { %v116_v58 = vmul.f32 %v735_v53, %v96_v16  ;;  %v117_v59 = vmul.f32 %v735_v53, %v97_v17  ;;  %v128_v60 = vmul.f32 %v733_v52, %v102_v18  ;;  %v129_v61 = vmul.f32 %v733_v52, %v103_v19 }
  0xb8   :  { %v148_v2 = vmul.f32 %v138_v46, %v735_v53  ;;  %v149_v3 = vmul.f32 %v139_v47, %v735_v53  ;;  %v152_v4 = vmul.f32 %v1057_v48, %v733_v52  ;;  %v153_v5 = vmul.f32 %v1056_v49, %v733_v52 }
  0xb9   :  { %v759_v8 = vadd.f32 %v128_v60, %v116_v58  ;;  %v761_v12 = vadd.f32 %v129_v61, %v117_v59  ;;  %v172_v14 = vmul.f32 %v162_v54, %v735_v53  ;;  %v173_v16 = vmul.f32 %v163_v55, %v735_v53 }
  0xba   :  { %v126_v6 = vpop.permute.xlu1 %125  ;;  %v114_v7 = vpop.permute.xlu0 %113 }
  0xbb   :  { %v130_v17 = vmul.f32 %v126_v6, %v104_v22  ;;  %v131_v24 = vmul.f32 %v126_v6, %v105_v23  ;;  %v154_v34 = vmul.f32 %v1048_v28, %v126_v6  ;;  %v155_v40 = vmul.f32 %v1046_v29, %v126_v6 }
  0xbc   :  { %v178_v46 = vmul.f32 %v1047_v32, %v126_v6  ;;  %v179_v47 = vmul.f32 %v1050_v33, %v126_v6  ;;  %v202_v50 = vmul.f32 %v1049_v38, %v126_v6  ;;  %v203_v54 = vmul.f32 %v1051_v39, %v126_v6 }
  0xbd   :  { %v118_v55 = vmul.f32 %v114_v7, %v98_v20  ;;  %v119_v58 = vmul.f32 %v114_v7, %v99_v21  ;;  %v150_v59 = vmul.f32 %v140_v26, %v114_v7  ;;  %v151_v60 = vmul.f32 %v141_v27, %v114_v7 }
  0xbe   :  { %v174_v61 = vmul.f32 %v164_v30, %v114_v7  ;;  %v175_v29 = vmul.f32 %v165_v31, %v114_v7  ;;  %v198_v32 = vmul.f32 %v188_v36, %v114_v7  ;;  %v199_v28 = vmul.f32 %v189_v37, %v114_v7 }
  0xbf   :  { %v789_v38 = vadd.f32 %v130_v17, %v118_v55  ;;  %v791_v33 = vadd.f32 %v131_v24, %v119_v58  ;;  %v793_v6 = vadd.f32 %v154_v34, %v150_v59  ;;  %v795_v20 = vadd.f32 %v155_v40, %v151_v60 }
  0xc0   :  { %v797_v10 = vadd.f32 %v178_v46, %v174_v61  ;;  %v799_v21 = vadd.f32 %v179_v47, %v175_v29  ;;  %v801_v26 = vadd.f32 %v152_v4, %v148_v2  ;;  %v803_v27 = vadd.f32 %v153_v5, %v149_v3 }
  0xc1   :  { %v212_v30 = vmul.f32 %v716_v42, %v789_v38  ;;  %v213_v31 = vmul.f32 %v716_v42, %v791_v33  ;;  %v218_v36 = vmul.f32 %v719_v43, %v793_v6  ;;  %v219_v29 = vmul.f32 %v719_v43, %v795_v20 }
  0xc2   :  { %v817_v37 = vadd.f32 %v202_v50, %v198_v32  ;;  %v819_v2 = vadd.f32 %v203_v54, %v199_v28  ;;  %v176_v3 = vmul.f32 %v1055_v56, %v733_v52  ;;  %v177_v4 = vmul.f32 %v1054_v57, %v733_v52 }
  0xc3   :  { %v222_v5 = vadd.f32 %v218_v36, %v212_v30  ;;  %v223_v7 = vadd.f32 %v219_v29, %v213_v31  ;;  %v228_v32 = vmul.f32 %v722_v44, %v797_v10  ;;  %v229_v28 = vmul.f32 %v722_v44, %v799_v21 }
  0xc4   :  { %v196_v17 = vmul.f32 %v186_v62, %v735_v53  ;;  %v197_v24 = vmul.f32 %v187_v63, %v735_v53  ;;  %v200_v34 = vmul.f32 %v1053_v0, %v733_v52  ;;  %v201_v40 = vmul.f32 %v1052_v1, %v733_v52 }
  0xc5   :  { %v232_v46 = vadd.f32 %v228_v32, %v222_v5  ;;  %v233_v47 = vadd.f32 %v229_v28, %v223_v7  ;;  %v210_v62 = vmul.f32 %v716_v42, %v759_v8  ;;  %v211_v53 = vmul.f32 %v716_v42, %v761_v12 }
  0xc6   :  { %v216_v63 = vmul.f32 %v719_v43, %v801_v26  ;;  %v217_v52 = vmul.f32 %v719_v43, %v803_v27  ;;  %v265_v50 = vstv %s785_s23  ;;  %v271_v54 = vstv %s787_s24 }
  0xc7   :  { %v238_v55 = vmul.f32 %v725_v45, %v817_v37  ;;  %v239_v58 = vmul.f32 %v725_v45, %v819_v2  ;;  %v865_v59 = vadd.f32 %v176_v3, %v172_v14  ;;  %v867_v60 = vadd.f32 %v177_v4, %v173_v16 }
  0xc8   :  { %v869_v61 = vadd.f32 %v200_v34, %v196_v17  ;;  %v871_v42 = vadd.f32 %v201_v40, %v197_v24  ;;  %v281_v30 = vstv %s805_s25  ;;  %v291_v43 = vstv %s807_s26 }
  0xc9   :  { %v242_v14 = vadd.f32 %v238_v55, %v232_v46  ;;  %v243_v31 = vadd.f32 %v239_v58, %v233_v47  ;;  %v220_v16 = vadd.f32 %v216_v63, %v210_v62  ;;  %v221_v36 = vadd.f32 %v217_v52, %v211_v53  ;;  %v250_v47 = vpop.permute.xlu1 %249 }
  0xca   :  { %v266_v29 = vmul.f32 %v265_v50, %v759_v8  ;;  %v267_v3 = vmul.f32 %v265_v50, %v761_v12  ;;  %v272_v4 = vmul.f32 %v271_v54, %v801_v26  ;;  %v273_v5 = vmul.f32 %v271_v54, %v803_v27 }
  0xcb   :  { %v226_v7 = vmul.f32 %v722_v44, %v865_v59  ;;  %v227_v32 = vmul.f32 %v722_v44, %v867_v60  ;;  %v888_v28 = vstv %s827_s27  ;;  %v891_v17 = vstv %s829_s28 }
  0xcc   :  { %v894_v24 = vstv %s835_s29  ;;  %v897_v34 = vstv %s837_s30  ;;  %v900_v40 = vstv %s847_s5  ;;  %v903_v46 = vstv %s849_s6 }
  0xcd   :  { %v230_v62 = vadd.f32 %v226_v7, %v220_v16  ;;  %v231_v53 = vadd.f32 %v227_v32, %v221_v36  ;;  %v236_v44 = vmul.f32 %v725_v45, %v869_v61  ;;  %v237_v63 = vmul.f32 %v725_v45, %v871_v42 }
  0xce   :  { %v254_v52 = vadd.f32 %v250_v47, %v242_v14  ;;  %v255_v55 = vadd.f32 %v250_v47, %v243_v31  ;;  %v276_v58 = vadd.f32 %v272_v4, %v266_v29  ;;  %v277_v39 = vadd.f32 %v273_v5, %v267_v3  ;;  %v246_v3 = vpop.permute.xlu0 %245 }
  0xcf   :  { %v268_v1 = vmul.f32 %v265_v50, %v789_v38  ;;  %v269_v0 = vmul.f32 %v265_v50, %v791_v33  ;;  %v274_v57 = vmul.f32 %v271_v54, %v793_v6  ;;  %v275_v56 = vmul.f32 %v271_v54, %v795_v20 }
  0xd0   :  { %v282_v16 = vmul.f32 %v281_v30, %v865_v59  ;;  %v283_v36 = vmul.f32 %v281_v30, %v867_v60  ;;  %v916_v7 = vstv %s875_s7  ;;  %v919_v32 = vstv %s877_s8 }
  0xd1   :  { %v240_v45 = vadd.f32 %v236_v44, %v230_v62  ;;  %v241_v14 = vadd.f32 %v237_v63, %v231_v53  ;;  %v278_v31 = vadd.f32 %v274_v57, %v268_v1  ;;  %v279_v29 = vadd.f32 %v275_v56, %v269_v0 }
  0xd2   :  { %v286_v4 = vadd.f32 %v282_v16, %v276_v58  ;;  %v287_v5 = vadd.f32 %v283_v36, %v277_v39  ;;  %v284_v50 = vmul.f32 %v281_v30, %v797_v10  ;;  %v285_v47 = vmul.f32 %v281_v30, %v799_v21  ;;  %v302_v30 = vpop.permute.xlu1 %301 }
  0xd3   :  { %v258_v54 = vsub.f32 %v254_v52, %v104_v22  ;;  %v259_v49 = vsub.f32 %v255_v55, %v105_v23  ;;  %v292_v48 = vmul.f32 %v291_v43, %v869_v61  ;;  %v293_v62 = vmul.f32 %v291_v43, %v871_v42 }
  0xd4   :  { %v288_v53 = vadd.f32 %v284_v50, %v278_v31  ;;  %v289_v57 = vadd.f32 %v285_v47, %v279_v29  ;;  %v326_v56 = vmul.f32 %v888_v28, %v759_v8  ;;  %v327_v39 = vmul.f32 %v888_v28, %v761_v12 }
  0xd5   :  { %v252_v0 = vadd.f32 %v246_v3, %v240_v45  ;;  %v253_v1 = vadd.f32 %v246_v3, %v241_v14  ;;  %v332_v22 = vmul.f32 %v891_v17, %v801_v26  ;;  %v333_v11 = vmul.f32 %v891_v17, %v803_v27 }
  0xd6   :  { %v296_v23 = vadd.f32 %v292_v48, %v286_v4  ;;  %v297_v44 = vadd.f32 %v293_v62, %v287_v5  ;;  %v294_v63 = vmul.f32 %v291_v43, %v817_v37  ;;  %v295_v52 = vmul.f32 %v291_v43, %v819_v2  ;;  %v306_v4 = vpop.permute.xlu0 %305 }
  0xd7   :  { %v336_v55 = vadd.f32 %v332_v22, %v326_v56  ;;  %v337_v58 = vadd.f32 %v333_v11, %v327_v39  ;;  %v342_v16 = vmul.f32 %v894_v24, %v865_v59  ;;  %v343_v36 = vmul.f32 %v894_v24, %v867_v60 }
  0xd8   :  { %v308_v45 = vadd.f32 %v302_v30, %v296_v23  ;;  %v309_v14 = vadd.f32 %v302_v30, %v297_v44  ;;  %v298_v31 = vadd.f32 %v294_v63, %v288_v53  ;;  %v299_v29 = vadd.f32 %v295_v52, %v289_v57 }
  0xd9   :  { %v256_v48 = vsub.f32 %v252_v0, %v102_v18  ;;  %v257_v3 = vsub.f32 %v253_v1, %v103_v19  ;;  %v346_v43 = vadd.f32 %v342_v16, %v336_v55  ;;  %v347_v5 = vadd.f32 %v343_v36, %v337_v58  ;;  %v362_v1 = vpop.permute.xlu1 %361 }
  0xda   :  { %v386_v50 = vmul.f32 %v900_v40, %v759_v8  ;;  %v387_v47 = vmul.f32 %v900_v40, %v761_v12  ;;  %v392_v62 = vmul.f32 %v903_v46, %v801_v26  ;;  %v393_v53 = vmul.f32 %v903_v46, %v803_v27 }
  0xdb   :  { %v955_v57 = vmul.f32 %v258_v54, %v258_v54  ;;  %v957_v18 = vmul.f32 %v259_v49, %v259_v49  ;;  %v352_v9 = vmul.f32 %v897_v34, %v869_v61  ;;  %v353_v19 = vmul.f32 %v897_v34, %v871_v42 }
  0xdc   :  { %v1058_v8 = vunpack.c.l.bf16 %v707_v35  ;;  %v1059_v12 = vunpack.c.h.bf16 %v707_v35  ;;  %v310_v26 = vadd.f32 %v306_v4, %v298_v31  ;;  %v311_v0 = vadd.f32 %v306_v4, %v299_v29 }
  0xdd   :  { %v356_v27 = vadd.f32 %v352_v9, %v346_v43  ;;  %v357_v54 = vadd.f32 %v353_v19, %v347_v5  ;;  %v396_v30 = vadd.f32 %v392_v62, %v386_v50  ;;  %v397_v49 = vadd.f32 %v393_v53, %v387_v47  ;;  %v366_v53 = vpop.permute.xlu1 %365 }
  0xde   :  { %v312_v56 = vsub.f32 %v308_v45, %v1058_v8  ;;  %v313_v39 = vsub.f32 %v309_v14, %v1059_v12  ;;  %v260_v22 = vmul.f32 %v256_v48, %v256_v48  ;;  %v261_v11 = vmul.f32 %v257_v3, %v257_v3 }
  0xdf   :  { %v402_v23 = vmul.f32 %v916_v7, %v865_v59  ;;  %v403_v44 = vmul.f32 %v916_v7, %v867_v60  ;;  %v368_v63 = vadd.f32 %v362_v1, %v356_v27  ;;  %v369_v52 = vadd.f32 %v362_v1, %v357_v54 }
  0xe0   :  { %v328_v35 = vmul.f32 %v888_v28, %v789_v38  ;;  %v329_v55 = vmul.f32 %v888_v28, %v791_v33  ;;  %v316_v58 = vmul.f32 %v312_v56, %v312_v56  ;;  %v317_v16 = vmul.f32 %v313_v39, %v313_v39  ;;  %v422_v56 = vpop.permute.xlu0 %421 }
  0xe1   :  { %v334_v36 = vmul.f32 %v891_v17, %v793_v6  ;;  %v335_v45 = vmul.f32 %v891_v17, %v795_v20  ;;  %v1060_v59 = vunpack.c.l.bf16 %v683_v13  ;;  %v1061_v60 = vunpack.c.h.bf16 %v683_v13 }
  0xe2   :  { %v406_v29 = vadd.f32 %v402_v23, %v396_v30  ;;  %v407_v48 = vadd.f32 %v403_v44, %v397_v49  ;;  %v344_v28 = vmul.f32 %v894_v24, %v797_v10  ;;  %v345_v43 = vmul.f32 %v894_v24, %v799_v21 }
  0xe3   :  { %v314_v14 = vsub.f32 %v310_v26, %v1060_v59  ;;  %v315_v31 = vsub.f32 %v311_v0, %v1061_v60  ;;  %v338_v3 = vadd.f32 %v334_v36, %v328_v35  ;;  %v339_v4 = vadd.f32 %v335_v45, %v329_v55 }
  0xe4   :  { %v1062_v5 = vunpack.c.l.bf16 %v713_v41  ;;  %v1063_v17 = vunpack.c.h.bf16 %v713_v41  ;;  %v412_v13 = vmul.f32 %v919_v32, %v869_v61  ;;  %v413_v62 = vmul.f32 %v919_v32, %v871_v42 }
  0xe5   :  { %v348_v9 = vadd.f32 %v344_v28, %v338_v3  ;;  %v349_v19 = vadd.f32 %v345_v43, %v339_v4  ;;  %v354_v8 = vmul.f32 %v897_v34, %v817_v37  ;;  %v355_v24 = vmul.f32 %v897_v34, %v819_v2 }
  0xe6   :  { %v372_v50 = vsub.f32 %v368_v63, %v1062_v5  ;;  %v373_v47 = vsub.f32 %v369_v52, %v1063_v17  ;;  %v388_v41 = vmul.f32 %v900_v40, %v789_v38  ;;  %v389_v12 = vmul.f32 %v900_v40, %v791_v33 }
  0xe7   :  { %v394_v61 = vmul.f32 %v903_v46, %v793_v6  ;;  %v395_v42 = vmul.f32 %v903_v46, %v795_v20  ;;  %v416_v39 = vadd.f32 %v412_v13, %v406_v29  ;;  %v417_v26 = vadd.f32 %v413_v62, %v407_v48 }
  0xe8   :  { %v358_v0 = vadd.f32 %v354_v8, %v348_v9  ;;  %v359_v1 = vadd.f32 %v355_v24, %v349_v19  ;;  %v404_v34 = vmul.f32 %v916_v7, %v797_v10  ;;  %v405_v38 = vmul.f32 %v916_v7, %v799_v21  ;;  %v426_v7 = vpop.permute.xlu1 %425 }
  0xe9   :  { %v398_v27 = vadd.f32 %v394_v61, %v388_v41  ;;  %v399_v54 = vadd.f32 %v395_v42, %v389_v12  ;;  %v428_v30 = vadd.f32 %v422_v56, %v416_v39  ;;  %v429_v33 = vadd.f32 %v422_v56, %v417_v26 }
  0xea   :  { %v370_v40 = vadd.f32 %v366_v53, %v358_v0  ;;  %v371_v49 = vadd.f32 %v366_v53, %v359_v1  ;;  %v414_v20 = vmul.f32 %v919_v32, %v817_v37  ;;  %v415_v46 = vmul.f32 %v919_v32, %v819_v2 }
  0xeb   :  { %v408_v6 = vadd.f32 %v404_v34, %v398_v27  ;;  %v409_v23 = vadd.f32 %v405_v38, %v399_v54  ;;  %v318_v44 = vmul.f32 %v314_v14, %v314_v14  ;;  %v319_v63 = vmul.f32 %v315_v31, %v315_v31 }
  0xec   :  { %v1064_v52 = vunpack.c.l.bf16 %v687_v15  ;;  %v1065_v35 = vunpack.c.h.bf16 %v687_v15  ;;  %v376_v55 = vmul.f32 %v372_v50, %v372_v50  ;;  %v377_v36 = vmul.f32 %v373_v47, %v373_v47 }
  0xed   :  { %v418_v45 = vadd.f32 %v414_v20, %v408_v6  ;;  %v419_v59 = vadd.f32 %v415_v46, %v409_v23  ;;  %v320_v60 = vadd.f32 %v316_v58, %v260_v22  ;;  %v321_v29 = vadd.f32 %v317_v16, %v261_v11 }
  0xee   :  { %v374_v10 = vsub.f32 %v370_v40, %v1064_v52  ;;  %v375_v21 = vsub.f32 %v371_v49, %v1065_v35  ;;  %v1066_v37 = vunpack.c.l.bf16 %v731_v51  ;;  %v1067_v2 = vunpack.c.h.bf16 %v731_v51 }
  0xef   :  { %v430_v3 = vadd.f32 %v426_v7, %v418_v45  ;;  %v431_v4 = vadd.f32 %v426_v7, %v419_v59  ;;  %v322_v15 = vadd.f32 %v318_v44, %v955_v57  ;;  %v323_v28 = vadd.f32 %v319_v63, %v957_v18 }
  0xf0   :  { %v432_v48 = vsub.f32 %v428_v30, %v1066_v37  ;;  %v433_v32 = vsub.f32 %v429_v33, %v1067_v2  ;;  %v378_v14 = vmul.f32 %v374_v10, %v374_v10  ;;  %v379_v31 = vmul.f32 %v375_v21, %v375_v21 }
  0xf1   :  { %v380_v43 = vadd.f32 %v376_v55, %v320_v60  ;;  %v381_v5 = vadd.f32 %v377_v36, %v321_v29  ;;  %v1068_v50 = vunpack.c.l.bf16 %v697_v25  ;;  %v1069_v11 = vunpack.c.h.bf16 %v697_v25 }
  0xf2   :  { %v436_v16 = vmul.f32 %v432_v48, %v432_v48  ;;  %v437_v17 = vmul.f32 %v433_v32, %v433_v32  ;;  %v382_v51 = vadd.f32 %v378_v14, %v322_v15  ;;  %v383_v47 = vadd.f32 %v379_v31, %v323_v28 }
  0xf3   :  { %v434_v22 = vsub.f32 %v430_v3, %v1068_v50  ;;  %v435_v58 = vsub.f32 %v431_v4, %v1069_v11 }
  0xf4   :  { %v440_v53 = vadd.f32 %v436_v16, %v380_v43  ;;  %v441_v9 = vadd.f32 %v437_v17, %v381_v5 }
  0xf5   :  { %v438_v13 = vmul.f32 %v434_v22, %v434_v22  ;;  %v439_v62 = vmul.f32 %v435_v58, %v435_v58 }
  0xf7   :  { %v442_v19 = vadd.f32 %v438_v13, %v382_v51  ;;  %v443_v57 = vadd.f32 %v439_v62, %v383_v47 }
  0xf9   :  { %v444_v18 = vadd.f32 %v442_v19, %v440_v53  ;;  %v445_v8 = vadd.f32 %v443_v57, %v441_v9 }
  0xfb   :  { %450 = vst [vmem:[#allocation9] sm:$0xff] %v444_v18  ;;  %451 = vst [vmem:[#allocation9 + $0x8] sm:$0xff] %v445_v8 }
  0xfc   :  { %578 = shalt.err (!%p575_p11)
}
  0xfd   :  { %s579_s14 = scalar_lea.hbm %s1045_s4, 256 }
  0xfe   :  { %p580_p12 = scmp.ne.s32.totalorder %s1045_s4, %s579_s14  ;;  %p583_p13 = scmp.lt.u32.totalorder %s579_s14, %s1045_s4 }
 0x100   :  { %p585_p0 = pnand %p583_p13, %p580_p12 }
 0x102   :  { %588 = shalt.err (!%p585_p0)
}
 0x103   :  { %461 = dma.vmem_to_hbm [thread:$0]  %s459_s10, 256, %s1045_s4, [#allocation6]  }
 0x104   :  { %595 = dma.done.wait [#allocation6], 256  }
 0x105   :  { %596 = vsyncadd [#allocation6], 4294967040 }
 0x106   :  { %465 = vsyncpa [#allocation5], 1 }
 0x107   :  { %466 = vsyncpa [#allocation8], 1 }
 0x108   :  { %467 = vsyncpa [#allocation6], 1 }

</bundles_post_ra>
